<compile_context>
chip_gen: v6e
topology: v6e:2x2x1
jax: 0.10.0
libtpu: 0.0.40
codegen_flags: <defaults>
</compile_context>

<pallas_src>
import functools

import numpy as np
import jax
import jax.numpy as jnp
from jax.experimental import pallas as pl
from jax.experimental.pallas import tpu as pltpu


_LANE = 128                 # lane width / output padding quantum
_MAX_TK = 2048              # max contraction (L_in) chunk
_MAX_TM = 2048              # max row tile
_BLOCK_BUDGET = 28 << 20    # VMEM budget for pipelined blocks (safe on v5e/v6e/v7x)
_VMEM_CAP = 44 << 20        # never request more scoped VMEM than this (v7x: 64 MiB phys)


def _round_up(a: int, b: int) -> int:
    return ((a + b - 1) // b) * b


# ----------------------------- kernels --------------------------------------
def _pool_kernel_single(x_ref, p_ref, o_ref, *, precision):
    # Whole contraction in one block: (tm, L_in) @ (L_in, L_out_pad) on the MXU.
    o_ref[...] = jnp.dot(
        x_ref[...], p_ref[...],
        preferred_element_type=jnp.float32, precision=precision,
    ).astype(o_ref.dtype)


def _pool_kernel_ktiled(x_ref, p_ref, o_ref, acc_ref, *, precision):
    # Streaming contraction: accumulate (tm, tk) @ (tk, L_out_pad) chunks in f32.
    @pl.when(pl.program_id(1) == 0)
    def _():
        acc_ref[...] = jnp.zeros_like(acc_ref)

    acc_ref[...] += jnp.dot(
        x_ref[...], p_ref[...],
        preferred_element_type=jnp.float32, precision=precision,
    )

    @pl.when(pl.program_id(1) == pl.num_programs(1) - 1)
    def _():
        o_ref[...] = acc_ref[...].astype(o_ref.dtype)


# ------------------------- pooling matrix (host, cached) ---------------------
@functools.lru_cache(maxsize=None)
def _pool_matrix_np(l_in: int, l_out: int, l_out_pad: int):
    """(L_in, L_out_pad) f32 matrix: 1/window_size inside each adaptive window,
    zeros in the padded columns.  Window rule matches torch:
        start = floor(i*L_in/L_out), end = ceil((i+1)*L_in/L_out)."""
    i = np.arange(l_out)
    starts = (i * l_in) // l_out
    ends = -((-(i + 1) * l_in) // l_out)
    j = np.arange(l_in)[:, None]
    mask = (j >= starts[None, :]) & (j < ends[None, :])
    p = mask.astype(np.float64) / (ends - starts).astype(np.float64)[None, :]
    out = np.zeros((l_in, l_out_pad), dtype=np.float32)
    out[:, :l_out] = p.astype(np.float32)
    return out


# ------------------------------ wrapper --------------------------------------
def adaptive_avg_pool1d(x: jax.Array, output_size: int) -> jax.Array:
    """x: (N, C, L_in) -> (N, C, output_size); matches F.adaptive_avg_pool1d."""
    n, c, l_in = x.shape
    l_out = int(output_size)

    # PyTorch's avg pooling does not accept integer tensors; promote to f32.
    if not jnp.issubdtype(x.dtype, jnp.floating):
        x = x.astype(jnp.float32)
    dtype = x.dtype
    x_item = jnp.dtype(dtype).itemsize

    # P dtype: native bf16 MXU path for bf16 inputs, exact f32 weights otherwise.
    p_dtype = jnp.bfloat16 if dtype == jnp.bfloat16 else jnp.float32
    p_item = jnp.dtype(p_dtype).itemsize
    precision = (jax.lax.Precision.HIGHEST if p_dtype == jnp.float32
                 else jax.lax.Precision.DEFAULT)

    # Lane-dense output width (dense vst instead of masked partial stores).
    l_out_pad = _round_up(l_out, _LANE)
    p = jnp.asarray(_pool_matrix_np(l_in, l_out, l_out_pad), dtype=p_dtype)

    m = n * c
    x2d = x.reshape(m, l_in)
    sub = max(8, 32 // x_item)          # sublane multiple for this dtype

    # --- contraction (L_in) tiling -------------------------------------------
    if l_in <= _MAX_TK:
        tk = l_in
    else:
        tk = l_in                       # fallback: whole K in one block
        for cand in range(_MAX_TK, 0, -_LANE):
            if l_in % cand == 0:        # clean lane-aligned divisor
                tk = cand
                break
    kt = l_in // tk

    # --- row (N*C) tiling from the VMEM block budget ---------------------------
    p_block_bytes = 2 * tk * l_out_pad * p_item                 # double-buffered P
    acc_row_bytes = l_out_pad * 4 if kt > 1 else 0              # f32 accumulator
    per_row = 2 * tk * x_item + 2 * l_out_pad * x_item + acc_row_bytes
    tm_cap = max(sub, (_BLOCK_BUDGET - p_block_bytes) // per_row)
    tm_target = max(sub, min(tm_cap, _MAX_TM) // sub * sub)

    if m <= tm_target:
        # Small problems: one row block, but split once above ~1k rows so the
        # second TensorCore (v7x) is not left idle.
        tm = _round_up(pl.cdiv(m, 2), sub) if m > 1024 else m
    else:
        tm = tm_target
    if tm != m:
        steps = pl.cdiv(m, tm)
        if steps > 1 and steps % 2 == 1:            # balance across 2 TCs
            tm = max(sub, _round_up(pl.cdiv(m, steps + 1), sub))
    rows = pl.cdiv(m, tm)

    # --- scoped VMEM: actual need + headroom, well under v7x's 64 MiB ----------
    need = (2 * tm * tk * x_item + p_block_bytes
            + 2 * tm * l_out_pad * x_item + tm * acc_row_bytes)
    vmem_limit = int(min(max(int(need * 1.25) + (2 << 20), 4 << 20), _VMEM_CAP))

    if kt == 1:
        y2d = pl.pallas_call(
            functools.partial(_pool_kernel_single, precision=precision),
            out_shape=jax.ShapeDtypeStruct((m, l_out_pad), dtype),
            grid=(rows,),
            in_specs=[
                pl.BlockSpec((tm, l_in), lambda i: (i, 0)),
                pl.BlockSpec((l_in, l_out_pad), lambda i: (0, 0)),
            ],
            out_specs=pl.BlockSpec((tm, l_out_pad), lambda i: (i, 0)),
            compiler_params=pltpu.CompilerParams(
                dimension_semantics=("parallel",),
                vmem_limit_bytes=vmem_limit,
            ),
        )(x2d, p)
    else:
        y2d = pl.pallas_call(
            functools.partial(_pool_kernel_ktiled, precision=precision),
            out_shape=jax.ShapeDtypeStruct((m, l_out_pad), dtype),
            grid=(rows, kt),
            in_specs=[
                pl.BlockSpec((tm, tk), lambda i, k: (i, k)),
                pl.BlockSpec((tk, l_out_pad), lambda i, k: (k, 0)),
            ],
            out_specs=pl.BlockSpec((tm, l_out_pad), lambda i, k: (i, 0)),
            scratch_shapes=[pltpu.VMEM((tm, l_out_pad), jnp.float32)],
            compiler_params=pltpu.CompilerParams(
                dimension_semantics=("parallel", "arbitrary"),
                vmem_limit_bytes=vmem_limit,
            ),
        )(x2d, p)

    if l_out_pad != l_out:
        y2d = y2d[:, :l_out]
    return y2d.reshape(n, c, l_out)


class Downsample:
    """Functional mirror of the PyTorch module."""

    def __init__(self, output_size):
        self.output_size = int(output_size)

    def __call__(self, x):
        return adaptive_avg_pool1d(x, self.output_size)


# ---------------- pure-JAX reference (independent of the kernel) -------------
def _ref_adaptive_avg_pool1d(x, l_out):
    _, _, l_in = x.shape
    cols = []
    for i in range(l_out):
        s = (i * l_in) // l_out
        e = -((-(i + 1) * l_in) // l_out)
        cols.append(jnp.mean(x[:, :, s:e], axis=-1))
    return jnp.stack(cols, axis=-1)


if __name__ == "__main__":
    key = jax.random.PRNGKey(0)

    def check(idx, n, c, l_in, l_out):
        x = jax.random.normal(jax.random.fold_in(key, idx), (n, c, l_in), jnp.float32)
        fn = jax.jit(functools.partial(adaptive_avg_pool1d, output_size=l_out))
        out = jax.block_until_ready(fn(x))
        ref = _ref_adaptive_avg_pool1d(x, l_out)
        assert out.shape == (n, c, l_out) and out.dtype == x.dtype
        err = float(jnp.max(jnp.abs(out - ref)))
        assert err < 1e-5, (n, c, l_in, l_out, err)

    # 1) small, uneven adaptive windows (typical Downsample path; grid of 1)
    check(0, 2, 16, 32, 12)
    # 2) row-tiled path: N*C = 2048 -> two balanced "parallel" row steps,
    #    padded lane-dense output (48 -> 128) sliced in the wrapper
    check(1, 4, 512, 256, 48)
    # 3) long-L_in path: K-tiled accumulator kernel (l_in=4096, tk=2048, kt=2)
    check(2, 1, 64, 4096, 32)

    print("KERNEL_OK")
</pallas_src>

<mosaic_0001>
module attributes {stable_mosaic.version = 11 : i64} {
  func.func @_pool_kernel_single(%arg0: i32, %arg1: memref<32x32xf32, #tpu.memory_space<vmem>>, %arg2: memref<32x128xf32, #tpu.memory_space<vmem>>, %arg3: memref<32x128xf32, #tpu.memory_space<vmem>>) attributes {dimension_semantics = [#tpu.dimension_semantics<parallel>], iteration_bounds = array<i64: 1>, scalar_prefetch = 0 : i64, scratch_operands = 0 : i64, tpu.core_type = #tpu.core_type<tc>, window_params = [{transform_indices = @transform_0, window_bounds = array<i64: 32, 32>}, {pipeline_mode = #tpu.pipeline_mode<synchronous>, transform_indices = @transform_1, window_bounds = array<i64: 32, 128>}, {transform_indices = @transform_2, window_bounds = array<i64: 32, 128>}]} {
    %c0 = arith.constant 0 : index
    %c0_0 = arith.constant 0 : index
    %0 = vector.load %arg1[%c0, %c0_0] : memref<32x32xf32, #tpu.memory_space<vmem>>, vector<32x32xf32>
    %c0_1 = arith.constant 0 : index
    %c0_2 = arith.constant 0 : index
    %1 = vector.load %arg2[%c0_1, %c0_2] : memref<32x128xf32, #tpu.memory_space<vmem>>, vector<32x128xf32>
    %cst = arith.constant dense<0.000000e+00> : vector<32x128xf32>
    %2 = tpu.matmul %0, %1, %cst {dimension_numbers = #tpu.dot_dimension_numbers<[1], [0], [0], [1], [0, 0, 1, 1], [], []>, precision = #tpu.contract_precision<fp32>} : vector<32x32xf32>, vector<32x128xf32>, vector<32x128xf32> -> vector<32x128xf32>
    %c0_3 = arith.constant 0 : index
    %c0_4 = arith.constant 0 : index
    %3 = vector.load %arg3[%c0_3, %c0_4] : memref<32x128xf32, #tpu.memory_space<vmem>>, vector<32x128xf32>
    tpu.vector_store %arg3[%c0_3, %c0_4], %2 {strides = array<i32>} : memref<32x128xf32, #tpu.memory_space<vmem>>, vector<32x128xf32>,
    return
  }
  func.func @transform_0(%arg0: i32) -> (i32, i32) {
    %c0_i32 = arith.constant 0 : i32
    %c0_i32_0 = arith.constant 0 : i32
    return %arg0, %c0_i32 : i32, i32
  }
  func.func @transform_1(%arg0: i32) -> (i32, i32) {
    %c0_i32 = arith.constant 0 : i32
    %c0_i32_0 = arith.constant 0 : i32
    %c0_i32_1 = arith.constant 0 : i32
    return %c0_i32, %c0_i32_0 : i32, i32
  }
  func.func @transform_2(%arg0: i32) -> (i32, i32) {
    %c0_i32 = arith.constant 0 : i32
    %c0_i32_0 = arith.constant 0 : i32
    return %arg0, %c0_i32 : i32, i32
  }
}

</mosaic_0001>

<bundles_post_ra>
// kernel: adaptive_avg_pool1d.1
= control target key start
LH: loop header
LB: loop body
LE: loop exit
PB: predicated region body
PF: predicated region fallthrough
CT: control target
= control target key end

     0   :  { %7 = vsyncpa [#allocation3], 0  ;;  %s1013_s0 = inlined_call_operand.hbm [shape: f32[32,32], index: 0, kind: input, shape index: {}]   ;;  %s1014_s1 = inlined_call_operand.hbm [shape: f32[32,128], index: 1, kind: input, shape index: {}]   ;;  %s1015_s2 = inlined_call_operand.vmem [shape: f32[32,128], index: 2, kind: output, shape index: {}]  }
   0x1   :  { %8 = vsyncpa [#allocation5], 0  ;;  %s864_s9 = smov [#allocation2]  }
   0x2   :  { %s14_s10 = sshll.u32 %s864_s9, 4  ;;  %s15_s10 = int_to_ptr.vmem [resolvable:$true] %s14_s10 }
   0x3   :  { %s828_s11 = scalar_lea.vmem %s15_s10, 512  ;;  %p833_p1 = scmp.lt.s32.totalorder %s15_s10, %s15_s10 }
   0x4   :  { %p829_p0 = scmp.ne.s32.totalorder %s15_s10, %s828_s11  ;;  %p834_p2 = scmp.lt.s32.totalorder %s828_s11, %s828_s11 }
   0x6   :  { %p835_p3 = por %p834_p2, %p833_p1 }
   0x8   :  { %p836_p4 = pnand %p835_p3, %p829_p0 }
   0xa   :  { %839 = shalt.err (!%p836_p4)
}
   0xb   :  { %s865_s12 = smov 128   ;;  %s866_s13 = smov 8  }
   0xc   :  { %20 = dma.hbm_to_vmem [thread:$0]  %s1013_s0, 512, %s15_s10, [#allocation3], %s865_s12, %s865_s12, %s866_s13  }
   0xd   :  { %s867_s16 = smov [#allocation4]  }
   0xe   :  { %s26_s17 = sshll.u32 %s867_s16, 4  ;;  %s27_s17 = int_to_ptr.vmem [resolvable:$true] %s26_s17 }
   0xf   :  { %s848_s18 = scalar_lea.vmem %s27_s17, 512  ;;  %p853_p6 = scmp.lt.s32.totalorder %s27_s17, %s27_s17 }
  0x10   :  { %p849_p5 = scmp.ne.s32.totalorder %s27_s17, %s848_s18  ;;  %p854_p7 = scmp.lt.s32.totalorder %s848_s18, %s848_s18 }
  0x12   :  { %p855_p8 = por %p854_p7, %p853_p6 }
  0x14   :  { %p856_p9 = pnand %p855_p8, %p849_p5 }
  0x16   :  { %859 = shalt.err (!%p856_p9)
}
  0x17   :  { %32 = dma.hbm_to_vmem [thread:$0]  %s1014_s1, 512, %s27_s17, [#allocation5], %s865_s12, %s865_s12, %s866_s13  }
  0x18   :  { %860 = dma.done.wait [#allocation3], 512  }
  0x19   :  { %861 = vsyncadd [#allocation3], 4294966784 }
  0x1a   :  { %862 = dma.done.wait [#allocation5], 512  }
  0x1b   :  { %863 = vsyncadd [#allocation5], 4294966784  ;;  %vm47_vm0 = vcmask 261120   ;;  %v46_v0 = vld [vmem:[#allocation4 + $0x18] sm:$0xff]  ;;  %v45_v1 = vld [vmem:[#allocation4 + $0x10] sm:$0xff] }
  0x1c   :  { %v44_v2 = vld [vmem:[#allocation4 + $0x8] sm:$0xff]  ;;  %v889_v3 = vand.u32 4294901760, %v46_v0  ;;  %v891_v4 = vand.u32 4294901760, %v45_v1  ;;  %v43_v6 = vld [vmem:[#allocation4] sm:$0xff]  ;;  %v41_v12 = vld [vmem:[#allocation2 + $0x10] sm:$0xff] }
  0x1d   :  { %v893_v5 = vand.u32 4294901760, %v44_v2  ;;  %v39_v7 = vld [vmem:[#allocation2] sm:$0xff]  ;;  %v40_v8 = vld [vmem:[#allocation2 + $0x8] sm:$0xff]  ;;  %v895_v9 = vand.u32 4294901760, %v43_v6  ;;  %v42_v13 = vld [vmem:[#allocation2 + $0x18] sm:$0xff]  ;;  %v55_v19 = vsel %vm47_vm0, %v41_v12, 0 }
  0x1e   :  { %v49_v10 = vsel %vm47_vm0, %v39_v7, 0  ;;  %v52_v11 = vsel %vm47_vm0, %v40_v8, 0  ;;  %732 = vmatprep.subr.mxu0 %v889_v3  ;;  %v195_v14 = vsub.f32 %v46_v0, %v889_v3  ;;  %v202_v17 = vsub.f32 %v45_v1, %v891_v4 }
  0x1f   :  { %v901_v15 = vand.u32 4294901760, %v49_v10  ;;  %v903_v16 = vand.u32 4294901760, %v52_v11  ;;  %733 = vmatpush3.msra.mxu0 %v889_v3  ;;  %v209_v18 = vsub.f32 %v44_v2, %v893_v5  ;;  %v58_v20 = vsel %vm47_vm0, %v42_v13, 0 }
  0x20   :  { %v216_v21 = vsub.f32 %v43_v6, %v895_v9  ;;  %734 = vmatprep.subr.mxu0 %v891_v4  ;;  %v912_v22 = vand.u32 4294901760, %v195_v14  ;;  %v920_v25 = vand.u32 4294901760, %v202_v17  ;;  %v926_v27 = vand.u32 4294901760, %v55_v19 }
  0x21   :  { %v915_v23 = vsub.f32 %v49_v10, %v901_v15  ;;  %v918_v24 = vsub.f32 %v52_v11, %v903_v16  ;;  %754 = vmatprep.mubr.f32.mxu1 %v901_v15  ;;  %735 = vmatpush3.msra.mxu0 %v891_v4  ;;  %v924_v26 = vand.u32 4294901760, %v209_v18  ;;  %v928_v28 = vand.u32 4294901760, %v58_v20 }
  0x22   :  { %v930_v29 = vand.u32 4294901760, %v216_v21  ;;  %736 = vmatprep.subr.mxu0 %v893_v5  ;;  %v197_v30 = vsub.f32 %v195_v14, %v912_v22  ;;  %v204_v33 = vsub.f32 %v202_v17, %v920_v25  ;;  %v940_v35 = vsub.f32 %v55_v19, %v926_v27 }
  0x23   :  { %v131_v31 = vand.u32 4294901760, %v915_v23  ;;  %v141_v32 = vand.u32 4294901760, %v918_v24  ;;  %737 = vmatpush3.msra.mxu0 %v893_v5  ;;  %v211_v34 = vsub.f32 %v209_v18, %v924_v26  ;;  %v943_v36 = vsub.f32 %v58_v20, %v928_v28 }
  0x24   :  { %738 = vmatprep.subr.mxu0 %v895_v9  ;;  %v198_v37 = vand.u32 4294901760, %v197_v30  ;;  %v205_v40 = vand.u32 4294901760, %v204_v33  ;;  %v151_v41 = vand.u32 4294901760, %v940_v35  ;;  %v218_v43 = vsub.f32 %v216_v21, %v930_v29 }
  0x25   :  { %v132_v38 = vsub.f32 %v915_v23, %v131_v31  ;;  %v142_v39 = vsub.f32 %v918_v24, %v141_v32  ;;  %739 = vmatpush3.msra.mxu0 %v895_v9  ;;  %v161_v42 = vand.u32 4294901760, %v943_v36  ;;  %v212_v46 = vand.u32 4294901760, %v211_v34 }
  0x26   :  { %746 = vmatprep.subr.mxu1 %v198_v37  ;;  %760 = vmatprep.subr.mxu0 %v195_v14  ;;  %v152_v47 = vsub.f32 %v940_v35, %v151_v41  ;;  %v219_v51 = vand.u32 4294901760, %v218_v43 }
  0x27   :  { %v133_v44 = vand.u32 4294901760, %v132_v38  ;;  %v143_v45 = vand.u32 4294901760, %v142_v39  ;;  %747 = vmatpush3.msra.mxu1 %v198_v37  ;;  %v162_v48 = vsub.f32 %v943_v36, %v161_v42 }
  0x28   :  { %748 = vmatprep.subr.mxu1 %v205_v40  ;;  %v153_v49 = vand.u32 4294901760, %v152_v47 }
  0x29   :  { %740 = vmatprep.mubr.f32.mxu0 %v133_v44  ;;  %749 = vmatpush3.msra.mxu1 %v205_v40  ;;  %v163_v50 = vand.u32 4294901760, %v162_v48 }
  0x2a   :  { %741 = vmatmul.mubr.f32.vlgmr.msra.gmra.mxu0 %v143_v45  ;;  %750 = vmatprep.subr.mxu1 %v212_v46 }
  0x2b   :  { %761 = vmatpush3.msra.mxu0 %v195_v14  ;;  %743 = vmatprep.mubr.f32.mxu0 %v153_v49 }
  0x2c   :  { %762 = vmatprep.subr.mxu0 %v202_v17  ;;  %751 = vmatpush3.msra.mxu1 %v212_v46 }
  0x2d   :  { %763 = vmatpush3.msra.mxu0 %v202_v17  ;;  %752 = vmatprep.subr.mxu1 %v219_v51 }
  0x2e   :  { %744 = vmatmul.mubr.f32.gmra.mxu0 %v163_v50  ;;  %764 = vmatprep.subr.mxu0 %v209_v18 }
  0x2f   :  { %753 = vmatpush3.msra.mxu1 %v219_v51  ;;  %765 = vmatpush3.msra.mxu0 %v209_v18 }
  0x30   :  { %755 = vmatmul.mubr.f32.vlgmr.msra.gmra.mxu1 %v903_v16  ;;  %766 = vmatprep.subr.mxu0 %v216_v21 }
  0x31   :  { %774 = vmatprep.subr.mxu1 %v889_v3  ;;  %767 = vmatpush3.msra.mxu0 %v216_v21 }
  0x32   :  { %768 = vmatprep.mubr.f32.mxu0 %v915_v23  ;;  %775 = vmatpush3.msra.mxu1 %v889_v3 }
  0x33   :  { %769 = vmatmul.mubr.f32.vlgmr.msra.gmra.mxu0 %v918_v24  ;;  %776 = vmatprep.subr.mxu1 %v891_v4 }
  0x34   :  { %788 = vmatprep.subr.mxu0 %v912_v22  ;;  %757 = vmatprep.mubr.f32.mxu1 %v926_v27 }
  0x35   :  { %777 = vmatpush3.msra.mxu1 %v891_v4  ;;  %789 = vmatpush3.msra.mxu0 %v912_v22 }
  0x36   :  { %758 = vmatmul.mubr.f32.gmra.mxu1 %v928_v28  ;;  %778 = vmatprep.subr.mxu1 %v893_v5 }
  0x37   :  { %790 = vmatprep.subr.mxu0 %v920_v25  ;;  %771 = vmatprep.mubr.f32.mxu0 %v940_v35 }
  0x38   :  { %779 = vmatpush3.msra.mxu1 %v893_v5  ;;  %791 = vmatpush3.msra.mxu0 %v920_v25 }
  0x39   :  { %780 = vmatprep.subr.mxu1 %v895_v9  ;;  %772 = vmatmul.mubr.f32.gmra.mxu0 %v943_v36 }
  0x3a   :  { %792 = vmatprep.subr.mxu0 %v924_v26  ;;  %781 = vmatpush3.msra.mxu1 %v895_v9 }
  0x3b   :  { %782 = vmatprep.mubr.f32.mxu1 %v131_v31  ;;  %793 = vmatpush3.msra.mxu0 %v924_v26 }
  0x3c   :  { %783 = vmatmul.mubr.f32.vlgmr.msra.gmra.mxu1 %v141_v32  ;;  %794 = vmatprep.subr.mxu0 %v930_v29 }
  0x3d   :  { %802 = vmatprep.subr.mxu1 %v889_v3  ;;  %795 = vmatpush3.msra.mxu0 %v930_v29 }
  0x3e   :  { %796 = vmatprep.mubr.f32.mxu0 %v901_v15  ;;  %803 = vmatpush3.msra.mxu1 %v889_v3 }
  0x3f   :  { %797 = vmatmul.mubr.f32.vlgmr.msra.gmra.mxu0 %v903_v16  ;;  %804 = vmatprep.subr.mxu1 %v891_v4 }
  0x40   :  { %785 = vmatprep.mubr.f32.mxu1 %v151_v41  ;;  %805 = vmatpush3.msra.mxu1 %v891_v4 }
  0x41   :  { %799 = vmatprep.mubr.f32.mxu0 %v926_v27  ;;  %786 = vmatmul.mubr.f32.gmra.mxu1 %v161_v42 }
  0x42   :  { %806 = vmatprep.subr.mxu1 %v893_v5  ;;  %810 = vmatprep.mubr.f32.mxu1 %v901_v15 }
  0x43   :  { %807 = vmatpush3.msra.mxu1 %v893_v5  ;;  %800 = vmatmul.mubr.f32.gmra.mxu0 %v928_v28 }
  0x44   :  { %808 = vmatprep.subr.mxu1 %v895_v9 }
  0x45   :  { %809 = vmatpush3.msra.mxu1 %v895_v9 }
  0x46   :  { %811 = vmatmul.mubr.f32.vlgmr.msra.gmra.mxu1 %v903_v16 }
  0x47   :  { %813 = vmatprep.mubr.f32.mxu1 %v926_v27 }
  0x4a   :  { %814 = vmatmul.mubr.f32.gmra.mxu1 %v928_v28 }
  0xea   :  { %v742_v52 = vpop.f32.mrf.mxu0 }
  0xec   :  { %v135_v53 = vpop.f32.mrf.mxu0 }
  0xee   :  { %v745_v54 = vpop.f32.mrf.mxu0 }
  0xf0   :  { %v155_v55 = vpop.f32.mrf.mxu0  ;;  %v756_v56 = vpop.f32.mrf.mxu1 }
  0xf1   :  { %v263_v63 = vadd.f32 %v756_v56, %v742_v52 }
  0xf2   :  { %v256_v57 = vpop.f32.mrf.mxu1 }
  0xf3   :  { %v770_v58 = vpop.f32.mrf.mxu0  ;;  %v257_v2 = vadd.f32 %v256_v57, %v135_v53 }
  0xf4   :  { %v362_v4 = vadd.f32 %v770_v58, %v263_v63 }
  0xf5   :  { %v354_v60 = vpop.f32.mrf.mxu0 }
  0xf6   :  { %v759_v59 = vpop.f32.mrf.mxu1  ;;  %v355_v7 = vadd.f32 %v354_v60, %v257_v2 }
  0xf7   :  { %v275_v5 = vadd.f32 %v759_v59, %v745_v54 }
  0xf8   :  { %v268_v61 = vpop.f32.mrf.mxu1 }
  0xf9   :  { %v773_v62 = vpop.f32.mrf.mxu0  ;;  %v269_v8 = vadd.f32 %v268_v61, %v155_v55 }
  0xfa   :  { %v376_v12 = vadd.f32 %v773_v62, %v275_v5 }
  0xfb   :  { %v368_v0 = vpop.f32.mrf.mxu0 }
  0xfc   :  { %v784_v1 = vpop.f32.mrf.mxu1  ;;  %v369_v16 = vadd.f32 %v368_v0, %v269_v8 }
  0xfd   :  { %v461_v9 = vadd.f32 %v784_v1, %v362_v4 }
  0xfe   :  { %v452_v3 = vpop.f32.mrf.mxu1 }
  0xff   :  { %v798_v6 = vpop.f32.mrf.mxu0  ;;  %v453_v13 = vadd.f32 %v452_v3, %v355_v7 }
 0x100   :  { %v566_v17 = vadd.f32 %v798_v6, %v461_v9 }
 0x101   :  { %v559_v10 = vpop.f32.mrf.mxu0  ;;  %v787_v11 = vpop.f32.mrf.mxu1 }
 0x102   :  { %v477_v18 = vadd.f32 %v787_v11, %v376_v12  ;;  %v560_v20 = vadd.f32 %v559_v10, %v453_v13 }
 0x103   :  { %v468_v14 = vpop.f32.mrf.mxu1  ;;  %v801_v15 = vpop.f32.mrf.mxu0 }
 0x104   :  { %v469_v21 = vadd.f32 %v468_v14, %v369_v16  ;;  %v578_v25 = vadd.f32 %v801_v15, %v477_v18 }
 0x105   :  { %v571_v23 = vpop.f32.mrf.mxu0 }
 0x106   :  { %v812_v19 = vpop.f32.mrf.mxu1  ;;  %v572_v28 = vadd.f32 %v571_v23, %v469_v21 }
 0x107   :  { %v659_v22 = vadd.f32 %v812_v19, %v566_v17 }
 0x108   :  { %v652_v24 = vpop.f32.mrf.mxu1 }
 0x109   :  { %675 = vst [vmem:[%s1015_s2 + $0x8] sm:$0xff] %v659_v22  ;;  %v653_v26 = vadd.f32 %v652_v24, %v560_v20 }
 0x10a   :  { %v815_v27 = vpop.f32.mrf.mxu1 }
 0x10b   :  { %674 = vst [vmem:[%s1015_s2] sm:$0xff] %v653_v26  ;;  %v671_v29 = vadd.f32 %v815_v27, %v578_v25 }
 0x10c   :  { %v664_v30 = vpop.f32.mrf.mxu1 }
 0x10d   :  { %677 = vst [vmem:[%s1015_s2 + $0x18] sm:$0xff] %v671_v29  ;;  %v665_v31 = vadd.f32 %v664_v30, %v572_v28 }
 0x10f   :  { %676 = vst [vmem:[%s1015_s2 + $0x10] sm:$0xff] %v665_v31 }
 0x110   :  { %682 = vsyncpa [#allocation3], 1 }
 0x111   :  { %683 = vsyncpa [#allocation5], 1 }

</bundles_post_ra>
